<compile_context>
chip_gen: v5e
topology: v5e:2x2
jax: 0.10.0
libtpu: 0.0.40
codegen_flags: <defaults>
</compile_context>

<pallas_src>
import functools

import jax
import jax.numpy as jnp
from jax.experimental import pallas as pl
from jax.experimental.pallas import tpu as pltpu

LANES = 128
_TARGET_BLOCK_BYTES = 2 << 20  # ~2 MiB per block; 4x this fits every VMEM default.


def _clamp_kernel(x_ref, o_ref, *, min_val, max_val):
    x = x_ref[...]
    lo = jnp.asarray(min_val, dtype=x.dtype)
    hi = jnp.asarray(max_val, dtype=x.dtype)
    o_ref[...] = jnp.clip(x, lo, hi)


def _clamp_2d(x2d, min_val, max_val, tile_rows):
    """Clamp a (rows, LANES) slab with a 1-D grid of (tile_rows, LANES) blocks."""
    rows, lanes = x2d.shape

    if rows <= tile_rows:
        # Single block equal to the full array (always a legal block shape).
        block_rows = rows
        grid = (1,)
    else:
        block_rows = tile_rows  # multiple of 32 -> legal for f32/bf16/int8 tilings
        grid = (pl.cdiv(rows, tile_rows),)  # ragged last block handled by Pallas

    kernel = functools.partial(_clamp_kernel, min_val=min_val, max_val=max_val)

    return pl.pallas_call(
        kernel,
        out_shape=jax.ShapeDtypeStruct((rows, lanes), x2d.dtype),
        grid_spec=pltpu.PrefetchScalarGridSpec(
            num_scalar_prefetch=0,
            grid=grid,
            in_specs=[pl.BlockSpec((block_rows, lanes), lambda i: (i, 0))],
            out_specs=pl.BlockSpec((block_rows, lanes), lambda i: (i, 0)),
        ),
        compiler_params=pltpu.CompilerParams(
            dimension_semantics=("parallel",)  # lets v7x shard across 2 TCs
        ),
    )(x2d)


def clamp_pallas(x, min_val=-1.0, max_val=1.0):
    """Elementwise clamp via a Pallas TPU kernel.

    Matches torch.clamp(x, min=min_val, max=max_val) (forward pass of Clamp).
    """
    orig_shape = x.shape
    orig_dtype = x.dtype
    n = x.size
    if n == 0:
        return x

    # dtype-adaptive block rows targeting ~2 MiB per block, multiple of 32 rows
    # (legal sublane tiling for f32 / bf16 / int8 alike).
    itemsize = jnp.dtype(orig_dtype).itemsize
    tile_rows = max(32, (_TARGET_BLOCK_BYTES // (LANES * itemsize)) // 32 * 32)

    flat = jnp.ravel(x)
    rem = n % LANES

    if rem == 0:
        # Fast path: no padding, no trailing slice — zero extra HBM passes.
        x2d = flat.reshape(n // LANES, LANES)
        out2d = _clamp_2d(x2d, min_val, max_val, tile_rows)
        return out2d.reshape(orig_shape)

    # Slow path (n not a multiple of 128): pad only up to the next lane
    # multiple (< 128 extra elements), then slice back.
    pad = LANES - rem
    flat_p = jnp.concatenate([flat, jnp.zeros((pad,), dtype=orig_dtype)])
    x2d = flat_p.reshape((n + pad) // LANES, LANES)
    out2d = _clamp_2d(x2d, min_val, max_val, tile_rows)
    return out2d.reshape(-1)[:n].reshape(orig_shape)


class Clamp:
    """JAX/Pallas equivalent of the PyTorch Clamp module (forward pass)."""

    def __init__(self, min=-1, max=+1):
        self.min = min
        self.max = max

    def __call__(self, x):
        return clamp_pallas(x, self.min, self.max)
    # TODO(synk): backward pass (grad masked by min<=x<=max) not implemented here.


if __name__ == "__main__":
    key = jax.random.PRNGKey(0)
    # NCHW input consistent with a conv-style module: (batch=2, C=4, H=16, W=16)
    x = jax.random.normal(key, (2, 4, 16, 16), dtype=jnp.float32) * 2.0

    mod = Clamp(min=-1, max=+1)
    y = mod(x)
    y = jax.block_until_ready(y)

    # reference check against plain JAX
    y_ref = jnp.clip(x, -1.0, 1.0)
    assert y.shape == x.shape and y.dtype == x.dtype
    assert jnp.max(jnp.abs(y - y_ref)) == 0.0

    # also exercise the ragged-row path (rows not a multiple of tile_rows is
    # covered implicitly; here check the non-128-multiple slow path)
    x2 = jax.random.normal(jax.random.PRNGKey(1), (3, 5, 7), dtype=jnp.float32) * 3.0
    y2 = jax.block_until_ready(mod(x2))
    assert jnp.max(jnp.abs(y2 - jnp.clip(x2, -1.0, 1.0))) == 0.0

    print("KERNEL_OK")
</pallas_src>

<mosaic_0001>
module attributes {stable_mosaic.version = 11 : i64} {
  func.func @_clamp_kernel(%arg0: i32, %arg1: memref<16x128xf32, #tpu.memory_space<vmem>>, %arg2: memref<16x128xf32, #tpu.memory_space<vmem>>) attributes {dimension_semantics = [#tpu.dimension_semantics<parallel>], iteration_bounds = array<i64: 1>, scalar_prefetch = 0 : i64, scratch_operands = 0 : i64, tpu.core_type = #tpu.core_type<tc>, window_params = [{transform_indices = @transform_0, window_bounds = array<i64: 16, 128>}, {transform_indices = @transform_1, window_bounds = array<i64: 16, 128>}]} {
    %c0 = arith.constant 0 : index
    %c0_0 = arith.constant 0 : index
    %0 = vector.load %arg1[%c0, %c0_0] : memref<16x128xf32, #tpu.memory_space<vmem>>, vector<16x128xf32>
    %cst = arith.constant -1.000000e+00 : f32
    %cst_1 = arith.constant 1.000000e+00 : f32
    %1 = vector.broadcast %cst : f32 to vector<16x128xf32>
    %2 = arith.maximumf %1, %0 : vector<16x128xf32>
    %3 = vector.broadcast %cst_1 : f32 to vector<16x128xf32>
    %4 = arith.minimumf %3, %2 : vector<16x128xf32>
    %c0_2 = arith.constant 0 : index
    %c0_3 = arith.constant 0 : index
    %5 = vector.load %arg2[%c0_2, %c0_3] : memref<16x128xf32, #tpu.memory_space<vmem>>, vector<16x128xf32>
    tpu.vector_store %arg2[%c0_2, %c0_3], %4 {strides = array<i32>} : memref<16x128xf32, #tpu.memory_space<vmem>>, vector<16x128xf32>,
    return
  }
  func.func @transform_0(%arg0: i32) -> (i32, i32) {
    %c0_i32 = arith.constant 0 : i32
    %c0_i32_0 = arith.constant 0 : i32
    return %arg0, %c0_i32 : i32, i32
  }
  func.func @transform_1(%arg0: i32) -> (i32, i32) {
    %c0_i32 = arith.constant 0 : i32
    %c0_i32_0 = arith.constant 0 : i32
    return %arg0, %c0_i32 : i32, i32
  }
}

</mosaic_0001>

<bundles_post_ra>
// kernel: tpu_custom_call.1
= control target key start
LH: loop header
LB: loop body
LE: loop exit
PB: predicated region body
PF: predicated region fallthrough
CT: control target
= control target key end

     0   :  { %6 = vsyncpa [#allocation3], 0  ;;  %s130_s0 = inlined_call_operand.hbm [shape: f32[16,128], index: 0, kind: input, shape index: {}]   ;;  %s131_s1 = inlined_call_operand.hbm [shape: f32[16,128], index: 1, kind: output, shape index: {}]  }
   0x1   :  { %7 = vsyncpa [#allocation4], 0  ;;  %s12_s8 = sshll.u32 %s130_s0, 4  ;;  %s110_s9 = smov [#allocation2]   ;;  %s13_s8 = int_to_ptr.hbm [resolvable:$true] %s12_s8 }
   0x2   :  { %s14_s10 = sshll.u32 %s110_s9, 4  ;;  %s111_s11 = smov 128   ;;  %s15_s10 = int_to_ptr.vmem [resolvable:$true] %s14_s10 }
   0x3   :  { %s112_s12 = smov 8  }
   0x4   :  { %20 = dma.hbm_to_vmem [thread:$0]  %s13_s8, 256, %s15_s10, [#allocation3], %s111_s11, %s111_s11, %s112_s12  }
   0x5   :  { %106 = dma.done.wait [#allocation3], 256  }
   0x6   :  { %107 = vsyncadd [#allocation3], 4294967040  ;;  %s113_s13 = smov [#allocation5]   ;;  %s39_s17 = sshll.u32 %s131_s1, 4  ;;  %v25_v0 = vld [vmem:[#allocation2] sm:$0xff]  ;;  %v26_v1 = vld [vmem:[#allocation2 + $0x8] sm:$0xff]  ;;  %s40_s17 = int_to_ptr.hbm [resolvable:$true] %s39_s17 }
   0x7   :  { %s37_s14 = sshll.u32 %s113_s13, 4  ;;  %v52_v2 = vclamps-f32 %v25_v0, 1.0  ;;  %v53_v3 = vclamps-f32 %v26_v1, 1.0  ;;  %s38_s14 = int_to_ptr.vmem [resolvable:$true] %s37_s14 }
   0x9   :  { %31 = vst [vmem:[#allocation5] sm:$0xff] %v52_v2 }
   0xa   :  { %32 = vst [vmem:[#allocation5 + $0x8] sm:$0xff] %v53_v3 }
   0xb   :  { %45 = dma.vmem_to_hbm [thread:$0]  %s38_s14, 256, %s40_s17, [#allocation4], %s111_s11, %s111_s11, %s112_s12  }
   0xc   :  { %108 = dma.done.wait [#allocation4], 256  }
   0xd   :  { %109 = vsyncadd [#allocation4], 4294967040 }
   0xe   :  { %50 = vsyncpa [#allocation3], 1 }
   0xf   :  { %51 = vsyncpa [#allocation4], 1 }

</bundles_post_ra>
